<compile_context>
chip_gen: v6e
topology: v6e:2x2x1
jax: 0.10.0
libtpu: 0.0.40
codegen_flags: <defaults>
</compile_context>

<pallas_src>
import jax
import jax.numpy as jnp
from jax.experimental import pallas as pl
from jax.experimental.pallas import tpu as pltpu


def _round_up(x, m):
    return -(-x // m) * m


def hippo_kernel(c_ref, h_ref, m_ref, w_ref, bias_ref, o_ref):
    # A_part = c @ blockdiag_H(I - A^T / t)          [tm, N] @ [N, N]   (MXU)
    a_part = jnp.dot(c_ref[...], m_ref[...], preferred_element_type=jnp.float32)
    # f (expanded per hippo state, B/t folded in) = h @ W_scaled  [tm,dim]@[dim,N]
    f_part = jnp.dot(h_ref[...], w_ref[...], preferred_element_type=jnp.float32)
    # out = A_part + f*B/t + bias*B/t   (scale & bias pre-folded in the wrapper)
    o_ref[...] = (a_part + f_part + bias_ref[...]).astype(o_ref.dtype)


def make_params(dim, c_dim, num_heads, key):
    q = jnp.arange(c_dim, dtype=jnp.float32)
    Bvec = jnp.sqrt(2.0 * q + 1.0)
    A = jnp.tril(Bvec * Bvec[:, None])
    A = A - jnp.diag(jnp.diag(A)) + jnp.diag(q + 1.0)   # tril w/ zero diag + diag(q+1)
    AT = A.T
    k1, k2 = jax.random.split(key)
    bound = 1.0 / jnp.sqrt(jnp.float32(dim))
    W = jax.random.uniform(k1, (num_heads, dim), jnp.float32, -bound, bound)   # Lf.weight
    bias = jax.random.uniform(k2, (num_heads,), jnp.float32, -bound, bound)    # Lf.bias
    return AT, Bvec, W, bias


def hippo_operands(AT, Bvec, W, bias, t, c_dim, num_heads):
    """t-dependent precompute (tiny).  If this sits inside a scan with varying t,
    hoist kron(I, A^T) and Wrep out of the step and only rescale by 1/t here."""
    t = jnp.asarray(t, jnp.float32)
    N = num_heads * c_dim
    M = jnp.eye(c_dim, dtype=jnp.float32) - AT.astype(jnp.float32) / t          # [c_dim, c_dim]
    M_bd = jnp.kron(jnp.eye(num_heads, dtype=jnp.float32), M)                   # [N, N] block-diag
    bsc = jnp.tile(Bvec.astype(jnp.float32) / t, num_heads)                     # [N]   B/t tiled
    # Wrep[d, j*c_dim + n] = W[j, d]; fold B/t into the weights & bias.
    Wrep = jnp.repeat(W.astype(jnp.float32), c_dim, axis=0).T                   # [dim, N]
    W_scaled = Wrep * bsc[None, :]                                              # [dim, N]
    bias_row = (jnp.repeat(bias.astype(jnp.float32), c_dim) * bsc).reshape(1, N)
    return M_bd, W_scaled, bias_row


def hippo_forward(c, h, t, *, AT, Bvec, W, bias, c_dim, num_heads, row_tile=8192):
    batch, lima_heads = c.shape[:2]
    dim = h.shape[-1]
    N = num_heads * c_dim                  # lane-dense width (128 for defaults)
    assert c.shape[-1] == N
    R = batch * lima_heads                 # rows = batch * num_lima_heads

    M_bd, W_scaled, bias_row = hippo_operands(AT, Bvec, W, bias, t, c_dim, num_heads)

    # Native dtype end-to-end: no wrapper-side astype / pad / slice HBM passes.
    c_flat = c.reshape(R, N)
    h_flat = h.reshape(R, dim)
    out_dtype = c.dtype

    # Row tile: multiple of the min sublane tile (8 for 4-byte, 16 for sub-4-byte
    # dtypes), capped at ~ceil(R/2) so the parallel grid has >=2 steps (v7x
    # 2-TC split) and at row_tile.  The last block may be ragged; Pallas masks
    # the out-of-range stores, so no padding and no out[:R] copy is needed.
    itemsize = min(jnp.dtype(c.dtype).itemsize, jnp.dtype(h.dtype).itemsize,
                   jnp.dtype(out_dtype).itemsize)
    sub = 8 if itemsize >= 4 else 16
    tm = min(int(row_tile), _round_up(-(-R // 2), sub))
    tm = max(sub, (tm // sub) * sub)
    grid = (pl.cdiv(R, tm),)

    cost = pl.CostEstimate(
        flops=2 * R * N * (N + dim),
        transcendentals=0,
        bytes_accessed=(R * (N * jnp.dtype(c.dtype).itemsize
                             + dim * jnp.dtype(h.dtype).itemsize
                             + N * jnp.dtype(out_dtype).itemsize)
                        + 4 * (N * N + dim * N + N)))

    out = pl.pallas_call(
        hippo_kernel,
        out_shape=jax.ShapeDtypeStruct((R, N), out_dtype),
        grid=grid,
        in_specs=[
            pl.BlockSpec((tm, N), lambda i: (i, 0)),       # c rows
            pl.BlockSpec((tm, dim), lambda i: (i, 0)),     # h rows (unreplicated)
            pl.BlockSpec((N, N), lambda i: (0, 0)),        # block-diag (I - A^T/t)
            pl.BlockSpec((dim, N), lambda i: (0, 0)),      # W replicated * B/t
            pl.BlockSpec((1, N), lambda i: (0, 0)),        # bias * B/t row
        ],
        out_specs=pl.BlockSpec((tm, N), lambda i: (i, 0)),
        compiler_params=pltpu.CompilerParams(
            dimension_semantics=("parallel",),
            vmem_limit_bytes=32 * 1024 * 1024),
        cost_estimate=cost,
    )(c_flat, h_flat, M_bd, W_scaled, bias_row)

    return out.reshape(batch, lima_heads, N)


def hippo_ref(c, h, t, AT, Bvec, W, bias, c_dim, num_heads):
    """Pure-JAX reference matching the PyTorch forward."""
    b, H = c.shape[:2]
    cf = c.astype(jnp.float32)
    hf = h.astype(jnp.float32)
    eye = jnp.eye(c_dim, dtype=jnp.float32)
    f = (hf @ W.T + bias)[..., None]                              # [b, H, num_heads, 1]
    c4 = cf.reshape(b, H, num_heads, c_dim)
    A_part = jnp.einsum('bhjm,mn->bhjn', c4, eye - AT / t)
    return (A_part + f * Bvec / t).reshape(b, H, -1)


if __name__ == "__main__":
    batch, num_heads, c_dim, dim = 2, 4, 32, 32
    t = 3.0

    key = jax.random.PRNGKey(0)
    kp, kc, kh = jax.random.split(key, 3)
    AT, Bvec, W, bias = make_params(dim, c_dim, num_heads, kp)

    c = jax.random.normal(kc, (batch, num_heads, num_heads * c_dim), jnp.float32)
    h = jax.random.normal(kh, (batch, num_heads, dim), jnp.float32)

    out = hippo_forward(c, h, t, AT=AT, Bvec=Bvec, W=W, bias=bias,
                        c_dim=c_dim, num_heads=num_heads)
    out = jax.block_until_ready(out)
    ref = hippo_ref(c, h, t, AT, Bvec, W, bias, c_dim, num_heads)
    assert out.shape == (batch, num_heads, num_heads * c_dim)
    assert jnp.allclose(out, ref, atol=1e-4, rtol=1e-4), "mismatch vs reference"

    # Multi-step grid with a ragged last block (no wrapper pad / out[:R] slice).
    c2 = jax.random.normal(jax.random.PRNGKey(1), (5, num_heads, num_heads * c_dim), jnp.float32)
    h2 = jax.random.normal(jax.random.PRNGKey(2), (5, num_heads, dim), jnp.float32)
    out2 = hippo_forward(c2, h2, t, AT=AT, Bvec=Bvec, W=W, bias=bias,
                         c_dim=c_dim, num_heads=num_heads, row_tile=8)
    out2 = jax.block_until_ready(out2)
    ref2 = hippo_ref(c2, h2, t, AT, Bvec, W, bias, c_dim, num_heads)
    assert jnp.allclose(out2, ref2, atol=1e-4, rtol=1e-4), "mismatch vs reference (ragged)"

    # bf16-native path: 16-sublane row tiles, bf16 in/out, no wrapper upcast.
    cb = c2.astype(jnp.bfloat16)
    hb = h2.astype(jnp.bfloat16)
    outb = hippo_forward(cb, hb, t, AT=AT, Bvec=Bvec, W=W, bias=bias,
                         c_dim=c_dim, num_heads=num_heads)
    outb = jax.block_until_ready(outb)
    refb = hippo_ref(cb, hb, t, AT, Bvec, W, bias, c_dim, num_heads)
    assert outb.dtype == jnp.bfloat16
    assert jnp.allclose(outb.astype(jnp.float32), refb, atol=5e-2, rtol=5e-2), \
        "mismatch vs reference (bf16)"

    # TODO(synk): Hippo.reconstruct (scipy Legendre eval) is not part of forward; not implemented.
    print("KERNEL_OK")
</pallas_src>

<mosaic_0001>
module attributes {stable_mosaic.version = 11 : i64} {
  func.func @hippo_kernel(%arg0: i32, %arg1: memref<8x128xf32, #tpu.memory_space<vmem>>, %arg2: memref<8x32xf32, #tpu.memory_space<vmem>>, %arg3: memref<128x128xf32, #tpu.memory_space<vmem>>, %arg4: memref<32x128xf32, #tpu.memory_space<vmem>>, %arg5: memref<1x128xf32, #tpu.memory_space<vmem>>, %arg6: memref<8x128xf32, #tpu.memory_space<vmem>>) attributes {dimension_semantics = [#tpu.dimension_semantics<parallel>], iteration_bounds = array<i64: 1>, scalar_prefetch = 0 : i64, scratch_operands = 0 : i64, tpu.core_type = #tpu.core_type<tc>, window_params = [{transform_indices = @transform_0, window_bounds = array<i64: 8, 128>}, {transform_indices = @transform_1, window_bounds = array<i64: 8, 32>}, {pipeline_mode = #tpu.pipeline_mode<synchronous>, transform_indices = @transform_2, window_bounds = array<i64: 128, 128>}, {pipeline_mode = #tpu.pipeline_mode<synchronous>, transform_indices = @transform_3, window_bounds = array<i64: 32, 128>}, {pipeline_mode = #tpu.pipeline_mode<synchronous>, transform_indices = @transform_4, window_bounds = array<i64: 1, 128>}, {transform_indices = @transform_5, window_bounds = array<i64: 8, 128>}]} {
    %c0 = arith.constant 0 : index
    %c0_0 = arith.constant 0 : index
    %0 = vector.load %arg1[%c0, %c0_0] : memref<8x128xf32, #tpu.memory_space<vmem>>, vector<8x128xf32>
    %c0_1 = arith.constant 0 : index
    %c0_2 = arith.constant 0 : index
    %1 = vector.load %arg3[%c0_1, %c0_2] : memref<128x128xf32, #tpu.memory_space<vmem>>, vector<128x128xf32>
    %cst = arith.constant dense<0.000000e+00> : vector<8x128xf32>
    %2 = tpu.matmul %0, %1, %cst {dimension_numbers = #tpu.dot_dimension_numbers<[1], [0], [0], [1], [0, 0, 1, 1], [], []>} : vector<8x128xf32>, vector<128x128xf32>, vector<8x128xf32> -> vector<8x128xf32>
    %c0_3 = arith.constant 0 : index
    %c0_4 = arith.constant 0 : index
    %3 = vector.load %arg2[%c0_3, %c0_4] : memref<8x32xf32, #tpu.memory_space<vmem>>, vector<8x32xf32>
    %c0_5 = arith.constant 0 : index
    %c0_6 = arith.constant 0 : index
    %4 = vector.load %arg4[%c0_5, %c0_6] : memref<32x128xf32, #tpu.memory_space<vmem>>, vector<32x128xf32>
    %cst_7 = arith.constant dense<0.000000e+00> : vector<8x128xf32>
    %5 = tpu.matmul %3, %4, %cst_7 {dimension_numbers = #tpu.dot_dimension_numbers<[1], [0], [0], [1], [0, 0, 1, 1], [], []>} : vector<8x32xf32>, vector<32x128xf32>, vector<8x128xf32> -> vector<8x128xf32>
    %6 = arith.addf %2, %5 : vector<8x128xf32>
    %c0_8 = arith.constant 0 : index
    %c0_9 = arith.constant 0 : index
    %7 = vector.load %arg5[%c0_8, %c0_9] : memref<1x128xf32, #tpu.memory_space<vmem>>, vector<1x128xf32>
    %8 = vector.broadcast %7 : vector<1x128xf32> to vector<8x128xf32>
    %9 = arith.addf %6, %8 : vector<8x128xf32>
    %c0_10 = arith.constant 0 : index
    %c0_11 = arith.constant 0 : index
    %10 = vector.load %arg6[%c0_10, %c0_11] : memref<8x128xf32, #tpu.memory_space<vmem>>, vector<8x128xf32>
    tpu.vector_store %arg6[%c0_10, %c0_11], %9 {strides = array<i32>} : memref<8x128xf32, #tpu.memory_space<vmem>>, vector<8x128xf32>,
    return
  }
  func.func @transform_0(%arg0: i32) -> (i32, i32) {
    %c0_i32 = arith.constant 0 : i32
    %c0_i32_0 = arith.constant 0 : i32
    return %arg0, %c0_i32 : i32, i32
  }
  func.func @transform_1(%arg0: i32) -> (i32, i32) {
    %c0_i32 = arith.constant 0 : i32
    %c0_i32_0 = arith.constant 0 : i32
    return %arg0, %c0_i32 : i32, i32
  }
  func.func @transform_2(%arg0: i32) -> (i32, i32) {
    %c0_i32 = arith.constant 0 : i32
    %c0_i32_0 = arith.constant 0 : i32
    %c0_i32_1 = arith.constant 0 : i32
    return %c0_i32, %c0_i32_0 : i32, i32
  }
  func.func @transform_3(%arg0: i32) -> (i32, i32) {
    %c0_i32 = arith.constant 0 : i32
    %c0_i32_0 = arith.constant 0 : i32
    %c0_i32_1 = arith.constant 0 : i32
    return %c0_i32, %c0_i32_0 : i32, i32
  }
  func.func @transform_4(%arg0: i32) -> (i32, i32) {
    %c0_i32 = arith.constant 0 : i32
    %c0_i32_0 = arith.constant 0 : i32
    %c0_i32_1 = arith.constant 0 : i32
    return %c0_i32, %c0_i32_0 : i32, i32
  }
  func.func @transform_5(%arg0: i32) -> (i32, i32) {
    %c0_i32 = arith.constant 0 : i32
    %c0_i32_0 = arith.constant 0 : i32
    return %arg0, %c0_i32 : i32, i32
  }
}

</mosaic_0001>

<bundles_post_ra>
// kernel: tpu_custom_call.1
= control target key start
LH: loop header
LB: loop body
LE: loop exit
PB: predicated region body
PF: predicated region fallthrough
CT: control target
= control target key end

     0   :  { %10 = vsyncpa [#allocation3], 0  ;;  %s530_s0 = inlined_call_operand.hbm [shape: f32[8,128], index: 0, kind: input, shape index: {}]   ;;  %s531_s1 = inlined_call_operand.hbm [shape: f32[8,32], index: 1, kind: input, shape index: {}]   ;;  %s532_s2 = inlined_call_operand.hbm [shape: f32[128,128], index: 2, kind: input, shape index: {}]   ;;  %s533_s3 = inlined_call_operand.hbm [shape: f32[32,128], index: 3, kind: input, shape index: {}]   ;;  %s534_s4 = inlined_call_operand.vmem [shape: f32[1,128], index: 4, kind: input, shape index: {}]   ;;  %s535_s5 = inlined_call_operand.hbm [shape: f32[8,128], index: 5, kind: output, shape index: {}]  }
   0x1   :  { %11 = vsyncpa [#allocation6], 0 }
   0x2   :  { %12 = vsyncpa [#allocation9], 0 }
   0x3   :  { %13 = vsyncpa [#allocation4], 0  ;;  %s451_s18 = smov [#allocation5]   ;;  %s452_s20 = smov [#allocation2]  }
   0x4   :  { %s30_s19 = sshll.u32 %s451_s18, 4  ;;  %s20_s21 = sshll.u32 %s452_s20, 4  ;;  %s31_s19 = int_to_ptr.vmem [resolvable:$true] %s30_s19  ;;  %s21_s21 = int_to_ptr.vmem [resolvable:$true] %s20_s21 }
   0x5   :  { %s351_s22 = scalar_lea.vmem %s31_s19, 128  ;;  %p356_p1 = scmp.lt.s32.totalorder %s31_s19, %s31_s19 }
   0x6   :  { %p352_p0 = scmp.ne.s32.totalorder %s31_s19, %s351_s22  ;;  %p357_p2 = scmp.lt.s32.totalorder %s351_s22, %s351_s22 }
   0x8   :  { %p358_p3 = por %p357_p2, %p356_p1 }
   0xa   :  { %p359_p4 = pnand %p358_p3, %p352_p0 }
   0xc   :  { %362 = shalt.err (!%p359_p4)
}
   0xd   :  { %33 = dma.hbm_to_vmem [thread:$0]  %s531_s1, 128, %s31_s19, [#allocation6]  }
   0xe   :  { %s371_s25 = scalar_lea.vmem %s21_s21, 128  ;;  %p376_p6 = scmp.lt.s32.totalorder %s21_s21, %s21_s21 }
   0xf   :  { %p372_p5 = scmp.ne.s32.totalorder %s21_s21, %s371_s25  ;;  %p377_p7 = scmp.lt.s32.totalorder %s371_s25, %s371_s25 }
  0x11   :  { %p378_p8 = por %p377_p7, %p376_p6 }
  0x13   :  { %p379_p9 = pnand %p378_p8, %p372_p5 }
  0x15   :  { %382 = shalt.err (!%p379_p9)
}
  0x16   :  { %23 = dma.hbm_to_vmem [thread:$0]  %s530_s0, 128, %s21_s21, [#allocation3]  }
  0x17   :  { %s453_s28 = smov [#allocation7]  }
  0x18   :  { %s39_s29 = sshll.u32 %s453_s28, 4  ;;  %s40_s29 = int_to_ptr.vmem [resolvable:$true] %s39_s29 }
  0x19   :  { %s391_s30 = scalar_lea.vmem %s40_s29, 2048  ;;  %p396_p11 = scmp.lt.s32.totalorder %s40_s29, %s40_s29 }
  0x1a   :  { %p392_p10 = scmp.ne.s32.totalorder %s40_s29, %s391_s30  ;;  %p397_p12 = scmp.lt.s32.totalorder %s391_s30, %s391_s30 }
  0x1c   :  { %p398_p13 = por %p397_p12, %p396_p11 }
  0x1e   :  { %p399_p0 = pnand %p398_p13, %p392_p10 }
  0x20   :  { %402 = shalt.err (!%p399_p0)
}
  0x21   :  { %s454_s1 = smov 128   ;;  %s455_s6 = smov 8  }
  0x22   :  { %45 = dma.hbm_to_vmem [thread:$0]  %s532_s2, 2048, %s40_s29, [#allocation6], %s454_s1, %s454_s1, %s455_s6  }
  0x23   :  { %s456_s9 = smov [#allocation8]  }
  0x24   :  { %s51_s10 = sshll.u32 %s456_s9, 4  ;;  %s52_s10 = int_to_ptr.vmem [resolvable:$true] %s51_s10 }
  0x25   :  { %s411_s0 = scalar_lea.vmem %s52_s10, 512  ;;  %p416_p2 = scmp.lt.s32.totalorder %s52_s10, %s52_s10 }
  0x26   :  { %p412_p1 = scmp.ne.s32.totalorder %s52_s10, %s411_s0  ;;  %p417_p3 = scmp.lt.s32.totalorder %s411_s0, %s411_s0 }
  0x28   :  { %p418_p4 = por %p417_p3, %p416_p2 }
  0x2a   :  { %p419_p5 = pnand %p418_p4, %p412_p1 }
  0x2c   :  { %422 = shalt.err (!%p419_p5)
}
  0x2d   :  { %57 = dma.hbm_to_vmem [thread:$0]  %s533_s3, 512, %s52_s10, [#allocation9], %s454_s1, %s454_s1, %s455_s6  }
  0x2e   :  { %443 = dma.done.wait [#allocation3], 128  }
  0x2f   :  { %444 = vsyncadd [#allocation3], 4294967168 }
  0x30   :  { %445 = dma.done.wait [#allocation6], 2176  }
  0x31   :  { %446 = vsyncadd [#allocation6], 4294965120 }
  0x32   :  { %447 = dma.done.wait [#allocation9], 512  }
  0x33   :  { %448 = vsyncadd [#allocation9], 4294966784  ;;  %v457_v0 = vmov 0.0   ;;  %vm458_vm0 = vmmov 0   ;;  %v88_v1 = vld [vmem:[#allocation7 + $0x78] sm:$0xff]  ;;  %v87_v2 = vld [vmem:[#allocation7 + $0x70] sm:$0xff] }
  0x34   :  { %299 = vmatprep.subr.mxu1 %v457_v0  ;;  %288 = vmatprep.subr.mxu0 %v457_v0  ;;  %v86_v3 = vld [vmem:[#allocation7 + $0x68] sm:$0xff]  ;;  %v93_v4 = vld [vmem:[#allocation8 + $0x18] sm:$0xff]  ;;  %v85_v5 = vld [vmem:[#allocation7 + $0x60] sm:$0xff]  ;;  %vm94_vm1 = vcmask 261120   ;;  %s459_s13 = smov [#allocation10]  }
  0x35   :  { %296 = vmatprep.mubr.msk.f32.mxu0 %vm458_vm0, %v457_v0  ;;  %331 = vmatprep.mubr.msk.f32.mxu1 %vm458_vm0, %v457_v0  ;;  %v92_v6 = vld [vmem:[#allocation8 + $0x10] sm:$0xff]  ;;  %v91_v7 = vld [vmem:[#allocation8 + $0x8] sm:$0xff]  ;;  %v84_v8 = vld [vmem:[#allocation7 + $0x58] sm:$0xff]  ;;  %s253_s14 = sshll.u32 %s459_s13, 4  ;;  %s254_s14 = int_to_ptr.vmem [resolvable:$true] %s253_s14 }
  0x36   :  { %300 = vmatpush3.msra.mxu1 %v88_v1  ;;  %289 = vmatpush3.msra.mxu0 %v93_v4  ;;  %v90_v9 = vld [vmem:[#allocation8] sm:$0xff]  ;;  %v83_v10 = vld [vmem:[#allocation7 + $0x50] sm:$0xff]  ;;  %v89_v11 = vld [vmem:[#allocation5] sm:$0xff]  ;;  %s423_s15 = scalar_lea.vmem %s254_s14, 128  ;;  %p428_p7 = scmp.lt.s32.totalorder %s254_s14, %s254_s14 }
  0x37   :  { %301 = vmatprep.subr.mxu1 %v457_v0  ;;  %290 = vmatprep.subr.mxu0 %v457_v0  ;;  %v82_v12 = vld [vmem:[#allocation7 + $0x48] sm:$0xff]  ;;  %v81_v13 = vld [vmem:[#allocation7 + $0x40] sm:$0xff]  ;;  %v80_v14 = vld [vmem:[#allocation7 + $0x38] sm:$0xff]  ;;  %p424_p6 = scmp.ne.s32.totalorder %s254_s14, %s423_s15  ;;  %p429_p8 = scmp.lt.s32.totalorder %s423_s15, %s423_s15 }
  0x38   :  { %302 = vmatpush3.msra.mxu1 %v87_v2  ;;  %291 = vmatpush3.msra.mxu0 %v92_v6  ;;  %v79_v15 = vld [vmem:[#allocation7 + $0x30] sm:$0xff]  ;;  %v78_v16 = vld [vmem:[#allocation7 + $0x28] sm:$0xff]  ;;  %v77_v17 = vld [vmem:[#allocation7 + $0x20] sm:$0xff] }
  0x39   :  { %303 = vmatprep.subr.mxu1 %v457_v0  ;;  %292 = vmatprep.subr.mxu0 %v457_v0  ;;  %v76_v18 = vld [vmem:[#allocation7 + $0x18] sm:$0xff]  ;;  %v75_v19 = vld [vmem:[#allocation7 + $0x10] sm:$0xff]  ;;  %v74_v20 = vld [vmem:[#allocation7 + $0x8] sm:$0xff]  ;;  %p430_p9 = por %p429_p8, %p428_p7 }
  0x3a   :  { %304 = vmatpush3.msra.mxu1 %v86_v3  ;;  %293 = vmatpush3.msra.mxu0 %v91_v7  ;;  %v73_v21 = vld [vmem:[#allocation7] sm:$0xff]  ;;  %v72_v22 = vld [vmem:[#allocation2] sm:$0xff] }
  0x3b   :  { %305 = vmatprep.subr.mxu1 %v457_v0  ;;  %294 = vmatprep.subr.mxu0 %v457_v0  ;;  %v265_v26 = vld [vmem:[%s534_s4] ss:$0 sm:$0xff]  ;;  %p431_p10 = pnand %p430_p9, %p424_p6 }
  0x3c   :  { %306 = vmatpush3.msra.mxu1 %v85_v5  ;;  %295 = vmatpush3.msra.mxu0 %v90_v9 }
  0x3d   :  { %307 = vmatprep.subr.mxu1 %v457_v0  ;;  %297 = vmatmul.mubr.msk.f32.vlgmr.msra.gmra.mxu0 %vm94_vm1, %v89_v11 }
  0x3e   :  { %308 = vmatpush3.msra.mxu1 %v84_v8 }
  0x3f   :  { %309 = vmatprep.subr.mxu1 %v457_v0 }
  0x40   :  { %310 = vmatpush3.msra.mxu1 %v83_v10 }
  0x41   :  { %311 = vmatprep.subr.mxu1 %v457_v0 }
  0x42   :  { %312 = vmatpush3.msra.mxu1 %v82_v12 }
  0x43   :  { %313 = vmatprep.subr.mxu1 %v457_v0 }
  0x44   :  { %314 = vmatpush3.msra.mxu1 %v81_v13 }
  0x45   :  { %315 = vmatprep.subr.mxu1 %v457_v0 }
  0x46   :  { %316 = vmatpush3.msra.mxu1 %v80_v14 }
  0x47   :  { %317 = vmatprep.subr.mxu1 %v457_v0 }
  0x48   :  { %318 = vmatpush3.msra.mxu1 %v79_v15 }
  0x49   :  { %319 = vmatprep.subr.mxu1 %v457_v0 }
  0x4a   :  { %320 = vmatpush3.msra.mxu1 %v78_v16 }
  0x4b   :  { %321 = vmatprep.subr.mxu1 %v457_v0 }
  0x4c   :  { %322 = vmatpush3.msra.mxu1 %v77_v17 }
  0x4d   :  { %323 = vmatprep.subr.mxu1 %v457_v0 }
  0x4e   :  { %324 = vmatpush3.msra.mxu1 %v76_v18 }
  0x4f   :  { %325 = vmatprep.subr.mxu1 %v457_v0 }
  0x50   :  { %326 = vmatpush3.msra.mxu1 %v75_v19 }
  0x51   :  { %327 = vmatprep.subr.mxu1 %v457_v0 }
  0x52   :  { %328 = vmatpush3.msra.mxu1 %v74_v20 }
  0x53   :  { %329 = vmatprep.subr.mxu1 %v457_v0 }
  0x54   :  { %330 = vmatpush3.msra.mxu1 %v73_v21 }
  0x55   :  { %332 = vmatmul.mubr.f32.vlgmr.msra.gmra.mxu1 %v72_v22 }
  0xfd   :  { %v164_v23 = vpop.f32.mrf.mxu0 }
  0xff   :  { %v298_v24 = vpop.f32.mrf.mxu0 }
 0x115   :  { %v234_v25 = vpop.f32.mrf.mxu1 }
 0x116   :  { %v235_v27 = vadd.f32 %v234_v25, %v164_v23 }
 0x117   :  { %v333_v28 = vpop.f32.mrf.mxu1 }
 0x118   :  { %v245_v29 = vadd.f32 %v265_v26, %v235_v27 }
 0x11a   :  { %246 = vst [vmem:[#allocation10] sm:$0xff] %v245_v29 }
 0x11b   :  { %434 = shalt.err (!%p431_p10)
}
 0x11c   :  { %256 = dma.vmem_to_hbm [thread:$0]  %s254_s14, 128, %s535_s5, [#allocation4]  }
 0x11d   :  { %449 = dma.done.wait [#allocation4], 128  }
 0x11e   :  { %450 = vsyncadd [#allocation4], 4294967168 }
 0x11f   :  { %260 = vsyncpa [#allocation3], 1 }
 0x120   :  { %261 = vsyncpa [#allocation6], 1 }
 0x121   :  { %262 = vsyncpa [#allocation9], 1 }
 0x122   :  { %263 = vsyncpa [#allocation4], 1 }

</bundles_post_ra>
